<compile_context>
chip_gen: v7x
topology: tpu7x:2x2x1
jax: 0.10.0
libtpu: 0.0.40
codegen_flags: <defaults>
</compile_context>

<pallas_src>
import functools

import jax
import jax.numpy as jnp
from jax.experimental import pallas as pl
from jax.experimental.pallas import tpu as pltpu

IMAGE_SIZE = 224
LANES = 128
VGG_MEAN = (131.45376586914062, 103.98748016357422, 91.46234893798828)
VGG_STD = (1.0, 1.0, 1.0)


# ----------------------------------------------------------------------------
# Kernels
# ----------------------------------------------------------------------------
def _normalize_kernel(scale_ref, bias_ref, x_ref, o_ref):
    # scale_ref / bias_ref: (C, 1, 1) f32 in VMEM (broadcast on the VPU)
    # x_ref:  (C, rows, 128)  native dtype (cast in-kernel)
    # o_ref:  (C, rows, 128)  f32, lane-dense
    x = x_ref[...].astype(jnp.float32)
    o_ref[...] = x * scale_ref[...] + bias_ref[...]


def _pool_normalize_kernel(scale_ref, bias_ref, ph_ref, x_ref, pwt_ref, o_ref,
                           *, w_first):
    # scale_ref / bias_ref: (C,) f32 in SMEM
    # ph_ref:  (224, H_in)   row-averaging matrix
    # x_ref:   (H_in, W_in)  one channel plane, native dtype
    # pwt_ref: (W_in, 224)   column-averaging matrix, transposed
    # o_ref:   (224, 224)
    ch = pl.program_id(1)
    x = x_ref[...].astype(jnp.float32)
    if w_first:  # static choice (fewer FLOPs / smaller intermediate when W > H)
        tmp = jnp.dot(x, pwt_ref[...], preferred_element_type=jnp.float32)
        pooled = jnp.dot(ph_ref[...], tmp, preferred_element_type=jnp.float32)
    else:
        tmp = jnp.dot(ph_ref[...], x, preferred_element_type=jnp.float32)
        pooled = jnp.dot(tmp, pwt_ref[...], preferred_element_type=jnp.float32)
    o_ref[...] = pooled * scale_ref[ch] + bias_ref[ch]


# ----------------------------------------------------------------------------
# Glue
# ----------------------------------------------------------------------------
def _adaptive_pool_matrix(in_size: int, out_size: int) -> jnp.ndarray:
    """(out_size, in_size) matrix M with M @ x == adaptive_avg_pool1d(x, out_size)."""
    i = jnp.arange(out_size)
    starts = (i * in_size) // out_size                 # floor
    ends = -((-(i + 1) * in_size) // out_size)         # ceil
    j = jnp.arange(in_size)
    mask = (j[None, :] >= starts[:, None]) & (j[None, :] < ends[:, None])
    counts = (ends - starts).astype(jnp.float32)
    return mask.astype(jnp.float32) / counts[:, None]


def _scale_bias():
    inv_std = 1.0 / jnp.asarray(VGG_STD, dtype=jnp.float32)
    bias = -jnp.asarray(VGG_MEAN, dtype=jnp.float32) * inv_std
    return inv_std, bias


@jax.jit
def _run_normalize(x):
    n, c, h, w = x.shape
    rows = (h * w) // LANES                   # 224*224 = 392 * 128 (lane-dense)
    x_r = x.reshape(n, c, rows, LANES)        # pure metadata reshape
    inv_std, bias = _scale_bias()
    scale = inv_std.reshape(c, 1, 1)
    bias = bias.reshape(c, 1, 1)
    out = pl.pallas_call(
        _normalize_kernel,
        out_shape=jax.ShapeDtypeStruct((n, c, rows, LANES), jnp.float32),
        grid=(n,),
        in_specs=[
            pl.BlockSpec((c, 1, 1), lambda i: (0, 0, 0)),
            pl.BlockSpec((c, 1, 1), lambda i: (0, 0, 0)),
            pl.BlockSpec((None, c, rows, LANES), lambda i: (i, 0, 0, 0)),
        ],
        out_specs=pl.BlockSpec((None, c, rows, LANES), lambda i: (i, 0, 0, 0)),
        compiler_params=pltpu.CompilerParams(
            dimension_semantics=("parallel",)),
    )(scale, bias, x_r)
    return out.reshape(n, c, h, w)


@jax.jit
def _run_pool_normalize(x):
    n, c, h, w = x.shape
    p_h = _adaptive_pool_matrix(h, IMAGE_SIZE)         # (224, H)
    p_w_t = _adaptive_pool_matrix(w, IMAGE_SIZE).T     # (W, 224)
    scale, bias = _scale_bias()                        # (3,), (3,) -> SMEM

    w_first = w > h                                    # static matmul order
    kernel = functools.partial(_pool_normalize_kernel, w_first=w_first)

    # Size the scoped VMEM limit from the actual plane (full-plane-per-step
    # design): native-dtype input double-buffered, in-kernel f32 cast, the two
    # P matrices (double-buffered), the matmul intermediate and the output.
    est = (2 * h * w * x.dtype.itemsize
           + 4 * h * w
           + 2 * 4 * (IMAGE_SIZE * h + w * IMAGE_SIZE)
           + 4 * IMAGE_SIZE * max(h, w)
           + 2 * 4 * IMAGE_SIZE * IMAGE_SIZE
           + (4 << 20))
    vmem_limit = max(32 << 20, min(int(est), 64 << 20))

    smem_spec = pl.BlockSpec(memory_space=pltpu.MemorySpace.SMEM)
    return pl.pallas_call(
        kernel,
        out_shape=jax.ShapeDtypeStruct((n, c, IMAGE_SIZE, IMAGE_SIZE),
                                       jnp.float32),
        grid=(n, c),
        in_specs=[
            smem_spec,
            smem_spec,
            pl.BlockSpec((IMAGE_SIZE, h), lambda i, j: (0, 0)),
            pl.BlockSpec((None, None, h, w), lambda i, j: (i, j, 0, 0)),
            pl.BlockSpec((w, IMAGE_SIZE), lambda i, j: (0, 0)),
        ],
        out_specs=pl.BlockSpec(
            (None, None, IMAGE_SIZE, IMAGE_SIZE), lambda i, j: (i, j, 0, 0)),
        compiler_params=pltpu.CompilerParams(
            dimension_semantics=("parallel", "parallel"),
            vmem_limit_bytes=vmem_limit),
    )(scale, bias, p_h, x, p_w_t)


def vgg_face_processing(image: jnp.ndarray) -> jnp.ndarray:
    """JAX/Pallas equivalent of VGGFaceProcessing.forward. Input NCHW (any dtype)."""
    n, c, h, w = image.shape
    if c != len(VGG_MEAN):
        raise ValueError(f"expected {len(VGG_MEAN)} channels, got {c}")
    if h == IMAGE_SIZE and w == IMAGE_SIZE:
        return _run_normalize(image)
    return _run_pool_normalize(image)


# ----------------------------------------------------------------------------
# Reference & test
# ----------------------------------------------------------------------------
def _reference(image):
    x = image.astype(jnp.float32)
    mean = jnp.asarray(VGG_MEAN, dtype=jnp.float32).reshape(1, 3, 1, 1)
    std = jnp.asarray(VGG_STD, dtype=jnp.float32).reshape(1, 3, 1, 1)
    _, _, h, w = x.shape
    if h != IMAGE_SIZE or w != IMAGE_SIZE:
        p_h = _adaptive_pool_matrix(h, IMAGE_SIZE)
        p_w = _adaptive_pool_matrix(w, IMAGE_SIZE)
        x = jnp.einsum('oh,nchw,pw->ncop', p_h, x, p_w)
    return (x - mean) / std


if __name__ == "__main__":
    key = jax.random.PRNGKey(0)
    k1, k2 = jax.random.split(key)

    # Path 1: already 224x224; bf16 input demonstrates the native-dtype read
    # (the in-kernel cast path also handles uint8/f32 identically).
    x1 = jax.random.uniform(k1, (2, 3, 224, 224), minval=0.0, maxval=255.0,
                            dtype=jnp.float32).astype(jnp.bfloat16)
    out1 = jax.block_until_ready(vgg_face_processing(x1))
    assert out1.shape == (2, 3, 224, 224) and out1.dtype == jnp.float32
    assert jnp.allclose(out1, _reference(x1), rtol=1e-5, atol=1e-4)

    # Path 2: non-224 spatial dims -> adaptive avg pool + normalize.
    x2 = jax.random.uniform(k2, (2, 3, 448, 336), minval=0.0, maxval=255.0,
                            dtype=jnp.float32)
    out2 = jax.block_until_ready(vgg_face_processing(x2))
    assert out2.shape == (2, 3, 224, 224) and out2.dtype == jnp.float32
    assert jnp.allclose(out2, _reference(x2), rtol=1e-5, atol=1e-4)

    print("KERNEL_OK")
</pallas_src>

<mosaic_0001>
module attributes {stable_mosaic.version = 11 : i64} {
  func.func @_normalize_kernel(%arg0: i32, %arg1: memref<3x1x1xf32, #tpu.memory_space<vmem>>, %arg2: memref<3x1x1xf32, #tpu.memory_space<vmem>>, %arg3: memref<1x3x392x128xbf16, #tpu.memory_space<vmem>>, %arg4: memref<1x3x392x128xf32, #tpu.memory_space<vmem>>) attributes {dimension_semantics = [#tpu.dimension_semantics<parallel>], iteration_bounds = array<i64: 2>, scalar_prefetch = 0 : i64, scratch_operands = 0 : i64, tpu.core_type = #tpu.core_type<tc>, window_params = [{pipeline_mode = #tpu.pipeline_mode<synchronous>, transform_indices = @transform_0, window_bounds = array<i64: 3, 1, 1>}, {pipeline_mode = #tpu.pipeline_mode<synchronous>, transform_indices = @transform_1, window_bounds = array<i64: 3, 1, 1>}, {transform_indices = @transform_2, window_bounds = array<i64: 1, 3, 392, 128>}, {transform_indices = @transform_3, window_bounds = array<i64: 1, 3, 392, 128>}]} {
    %c0 = arith.constant 0 : index
    %c0_0 = arith.constant 0 : index
    %c0_1 = arith.constant 0 : index
    %c0_2 = arith.constant 0 : index
    %0 = vector.load %arg3[%c0, %c0_0, %c0_1, %c0_2] : memref<1x3x392x128xbf16, #tpu.memory_space<vmem>>, vector<1x3x392x128xbf16>
    %1 = vector.shape_cast %0 : vector<1x3x392x128xbf16> to vector<3x392x128xbf16>
    %2 = arith.extf %1 : vector<3x392x128xbf16> to vector<3x392x128xf32>
    %c0_3 = arith.constant 0 : index
    %c0_4 = arith.constant 0 : index
    %c0_5 = arith.constant 0 : index
    %3 = vector.load %arg1[%c0_3, %c0_4, %c0_5] : memref<3x1x1xf32, #tpu.memory_space<vmem>>, vector<3x1x1xf32>
    %4 = vector.broadcast %3 : vector<3x1x1xf32> to vector<3x392x128xf32>
    %5 = arith.mulf %2, %4 : vector<3x392x128xf32>
    %c0_6 = arith.constant 0 : index
    %c0_7 = arith.constant 0 : index
    %c0_8 = arith.constant 0 : index
    %6 = vector.load %arg2[%c0_6, %c0_7, %c0_8] : memref<3x1x1xf32, #tpu.memory_space<vmem>>, vector<3x1x1xf32>
    %7 = vector.broadcast %6 : vector<3x1x1xf32> to vector<3x392x128xf32>
    %8 = arith.addf %5, %7 : vector<3x392x128xf32>
    %c0_9 = arith.constant 0 : index
    %c0_10 = arith.constant 0 : index
    %c0_11 = arith.constant 0 : index
    %c0_12 = arith.constant 0 : index
    %9 = vector.load %arg4[%c0_9, %c0_10, %c0_11, %c0_12] : memref<1x3x392x128xf32, #tpu.memory_space<vmem>>, vector<1x3x392x128xf32>
    %10 = vector.shape_cast %9 : vector<1x3x392x128xf32> to vector<3x392x128xf32>
    %11 = vector.shape_cast %8 : vector<3x392x128xf32> to vector<1x3x392x128xf32>
    tpu.vector_store %arg4[%c0_9, %c0_10, %c0_11, %c0_12], %11 {strides = array<i32>} : memref<1x3x392x128xf32, #tpu.memory_space<vmem>>, vector<1x3x392x128xf32>,
    return
  }
  func.func @transform_0(%arg0: i32) -> (i32, i32, i32) {
    %c0_i32 = arith.constant 0 : i32
    %c0_i32_0 = arith.constant 0 : i32
    %c0_i32_1 = arith.constant 0 : i32
    %c0_i32_2 = arith.constant 0 : i32
    return %c0_i32, %c0_i32_0, %c0_i32_1 : i32, i32, i32
  }
  func.func @transform_1(%arg0: i32) -> (i32, i32, i32) {
    %c0_i32 = arith.constant 0 : i32
    %c0_i32_0 = arith.constant 0 : i32
    %c0_i32_1 = arith.constant 0 : i32
    %c0_i32_2 = arith.constant 0 : i32
    return %c0_i32, %c0_i32_0, %c0_i32_1 : i32, i32, i32
  }
  func.func @transform_2(%arg0: i32) -> (i32, i32, i32, i32) {
    %c0_i32 = arith.constant 0 : i32
    %c0_i32_0 = arith.constant 0 : i32
    %c0_i32_1 = arith.constant 0 : i32
    %c0_i32_2 = arith.constant 0 : i32
    return %arg0, %c0_i32, %c0_i32_0, %c0_i32_1 : i32, i32, i32, i32
  }
  func.func @transform_3(%arg0: i32) -> (i32, i32, i32, i32) {
    %c0_i32 = arith.constant 0 : i32
    %c0_i32_0 = arith.constant 0 : i32
    %c0_i32_1 = arith.constant 0 : i32
    %c0_i32_2 = arith.constant 0 : i32
    return %arg0, %c0_i32, %c0_i32_0, %c0_i32_1 : i32, i32, i32, i32
  }
}

</mosaic_0001>

<bundles_post_ra>
// kernel: _run_normalize.1
= control target key start
LH: loop header
LB: loop body
LE: loop exit
PB: predicated region body
PF: predicated region fallthrough
CT: control target
= control target key end

     0   :  { %8 = vsyncpa [#allocation3], 0  ;;  %s1519_s12 = smov 0   ;;  %s2960_s0 = inlined_call_operand.vmem [shape: f32[3,1,1], index: 0, kind: input, shape index: {}]   ;;  %s2961_s1 = inlined_call_operand.hbm [shape: f32[3,1,1], index: 1, kind: input, shape index: {}]   ;;  %s2962_s2 = inlined_call_operand.vmem [shape: bf16[2,3,392,128], index: 2, kind: input, shape index: {}]   ;;  %s2963_s3 = inlined_call_operand.vmem [shape: f32[2,3,392,128], index: 3, kind: output, shape index: {}]  }
   0x1 LB: > { %s1525_s13 = sadd.s32 4294967295, %s1493_s12   ;;  %p1050_p0 = scmp.ge.s32.totalorder %s1493_s12, 1  ;;  %s1493_s12 = sphi %s1519_s12, %s14_s12  }
   0x2   : > { %p113_p1 = scmp.lt.s32.totalorder %s1493_s12, 3  ;;  %s1495_s14 = smov [#allocation2]  }
   0x3   : > { %s128_s15 = sshll.u32 %s1495_s14, 4  ;;  %p2964_p3 = scmp.eq.s32.totalorder %s1525_s13, 0  ;;  %s129_s15 = int_to_ptr.vmem [resolvable:$true] %s128_s15 }
   0x4   : > { %p1529_p2 = pnand %p1050_p0, %p113_p1  ;;  %s1455_s20 = scalar_lea.hbm %s2961_s1, 48 }
   0x5   : > { %p1456_p6 = scmp.ne.s32.totalorder %s2961_s1, %s1455_s20  ;;  %p1462_p10 = scmp.lt.u32.totalorder %s1455_s20, %s2961_s1 }
   0x6   : > { %s3054_s16 = scalar_select %p1529_p2, 1, 0 }
   0x7   : > { %p1435_p4 = pneg %p1529_p2 }
   0x9   : > { %p1538_p5 = pnand %p2964_p3, %p1435_p4 }
   0xb   : > { %p1457_p7 = pneg %p1538_p5 }
   0xd   : > { %p1458_p8 = pnand %p1457_p7, %p1456_p6 }
   0xf   : > { %p1459_p9 = pneg %p1458_p8 }
  0x11   : > { %p1464_p11 = pnand %p1462_p10, %p1459_p9 }
  0x13   : > { %1467 = shalt.err (!%p1464_p11)
}
  0x14   : > { %s1468_s25 = scalar_lea.vmem %s129_s15, 48  ;;  %s1475_s26 = scalar_lea.vmem %s129_s15, 64 }
  0x15   : > { %p1469_p12 = scmp.ne.s32.totalorder %s129_s15, %s1468_s25  ;;  %p1476_p1 = scmp.lt.s32.totalorder %s129_s15, %s129_s15 }
  0x16   : > { %p1477_p4 = scmp.lt.s32.totalorder %s1475_s26, %s1468_s25 }
  0x17   : > { %p1471_p13 = pnand %p1469_p12, %p1457_p7 }
  0x18   : > { %p1478_p3 = por %p1477_p4, %p1476_p1 }
  0x19   : > { %p1472_p0 = pneg %p1471_p13 }
  0x1b   : > { %p1479_p2 = pnand %p1478_p3, %p1472_p0 }
  0x1d   : > { %1482 = shalt.err (!%p1479_p2)
}
  0x1e   : > { %s1496_s27 = smov 16   ;;  %s1497_s28 = smov 1  }
  0x1f   : > { %1438 = dma.hbm_to_vmem [thread:$0]  (!%p1538_p5), %s2961_s1, 48, %s129_s15, [#allocation3], %s1496_s27, %s1496_s27, %s1497_s28  }
  0x20   : > { %p3056_p6 = scmp.ne.s32.totalorder %s3054_s16, 0 }
  0x22   : > { %152 = sbr.rel (%p3056_p6) target bundleno = 294 (0x126), region = 32 }
  0x29   : > { %p3057_p7 = scmp.eq.s32.totalorder %s1525_s13, 0 }
  0x2b   : > { %1488 = dma.done.wait (%p3057_p7), [#allocation3], 48   ;;  %p3058_p8 = pmov %p3057_p7 }
  0x2c   : > { %v1498_v0 = vmov 0   ;;  %v1059_v1 = vld [vmem:[%s2960_s0 + $0x2] ss:$0 sm:$0xff]  ;;  %v1057_v2 = vld [vmem:[%s2960_s0] ss:$0 sm:$0xff]  ;;  %p176_p2 = scmp.lt.s32.totalorder %s1525_s13, 1 }
  0x2d   : > { %1490 = vsyncadd (%p3058_p8), [#allocation3], 4294967248  ;;  %1454 = vset.pattern.permute.xlu1 %v1498_v0  ;;  %1453 = vset.pattern.permute.xlu0 %v1498_v0  ;;  %v1060_v3 = vld [vmem:[#allocation2] ss:$0 sm:$0xff]  ;;  %v1058_v4 = vld [vmem:[%s2960_s0 + $0x1] ss:$0 sm:$0xff] }
  0x2e   : > { %507 = vperm.xlu1 %1454, %v1059_v1   ;;  %499 = vperm.xlu0 %1453, %v1057_v2   ;;  %v1062_v5 = vld [vmem:[#allocation2 + $0x2] ss:$0 sm:$0xff]  ;;  %v1061_v6 = vld [vmem:[#allocation2 + $0x1] ss:$0 sm:$0xff]  ;;  %s3297_s13 = smov (!%p176_p2, %s1525_s13), 1 }
  0x2f   : > { %s1429_s10 = smul.u32 588, %s3297_s13 }
  0x30   : > { %s1430_s16 = smul.u32 1176, %s3297_s13 }
  0x31   : > { %s1581_s15 = scalar_lea.vmem %s2962_s2, %s1429_s10 }
  0x32   : > { %676 = vperm.xlu1 %1454, %v1060_v3   ;;  %503 = vperm.xlu0 %1453, %v1058_v4   ;;  %v1584_v7 = vld [vmem:[%s1581_s15] sm:$0xff]   ;;  %v1587_v8 = vld [vmem:[%s1581_s15 + $0x8] sm:$0xff]   ;;  %v1590_v9 = vld [vmem:[%s1581_s15 + $0x10] sm:$0xff]   ;;  %s2162_s18 = scalar_lea.vmem %s2963_s3, %s1430_s16 }
  0x33   : > { %v1593_v10 = vld [vmem:[%s1581_s15 + $0x18] sm:$0xff]   ;;  %v1596_v11 = vld [vmem:[%s1581_s15 + $0x20] sm:$0xff]   ;;  %v1599_v12 = vld [vmem:[%s1581_s15 + $0x28] sm:$0xff]  }
  0x34   : > { %v1605_v16 = vld [vmem:[%s1581_s15 + $0x30] sm:$0xff]   ;;  %v1608_v17 = vld [vmem:[%s1581_s15 + $0x38] sm:$0xff]   ;;  %v1615_v22 = vld [vmem:[%s1581_s15 + $0x40] sm:$0xff]  }
  0x35   : > { %v1618_v23 = vld [vmem:[%s1581_s15 + $0x48] sm:$0xff]   ;;  %v1625_v28 = vld [vmem:[%s1581_s15 + $0x50] sm:$0xff]   ;;  %v1628_v29 = vld [vmem:[%s1581_s15 + $0x58] sm:$0xff]  }
  0x36   : > { %684 = vperm.xlu1 %1454, %v1062_v5   ;;  %680 = vperm.xlu0 %1453, %v1061_v6   ;;  %v1635_v34 = vld [vmem:[%s1581_s15 + $0x60] sm:$0xff]   ;;  %v1638_v35 = vld [vmem:[%s1581_s15 + $0x68] sm:$0xff]   ;;  %v1645_v40 = vld [vmem:[%s1581_s15 + $0x70] sm:$0xff]  }
  0x37   : > { %v1648_v41 = vld [vmem:[%s1581_s15 + $0x78] sm:$0xff]   ;;  %v1655_v46 = vld [vmem:[%s1581_s15 + $0x80] sm:$0xff]   ;;  %v1658_v47 = vld [vmem:[%s1581_s15 + $0x88] sm:$0xff]  }
  0x38   : > { %v1665_v52 = vld [vmem:[%s1581_s15 + $0x90] sm:$0xff]   ;;  %v1668_v53 = vld [vmem:[%s1581_s15 + $0x98] sm:$0xff]   ;;  %v1675_v58 = vld [vmem:[%s1581_s15 + $0xa0] sm:$0xff]  }
  0x39   : > { %v1678_v59 = vld [vmem:[%s1581_s15 + $0xa8] sm:$0xff]   ;;  %v1685_v0 = vld [vmem:[%s1581_s15 + $0xb0] sm:$0xff]   ;;  %v1688_v1 = vld [vmem:[%s1581_s15 + $0xb8] sm:$0xff]  }
  0x3a   : > { %v1695_v6 = vld [vmem:[%s1581_s15 + $0x188] sm:$0xff]   ;;  %v1698_v61 = vld [vmem:[%s1581_s15 + $0x190] sm:$0xff]   ;;  %v1705_v3 = vld [vmem:[%s1581_s15 + $0x198] sm:$0xff]  }
  0x3b   : > { %v1708_v57 = vld [vmem:[%s1581_s15 + $0x1a0] sm:$0xff]   ;;  %v1715_v62 = vld [vmem:[%s1581_s15 + $0x1a8] sm:$0xff]   ;;  %v1718_v55 = vld [vmem:[%s1581_s15 + $0x1b0] sm:$0xff]  }
  0x3c   : > { %v1725_v4 = vld [vmem:[%s1581_s15 + $0x1b8] sm:$0xff]   ;;  %v1728_v51 = vld [vmem:[%s1581_s15 + $0x1c0] sm:$0xff]   ;;  %v1735_v2 = vld [vmem:[%s1581_s15 + $0x1c8] sm:$0xff]  }
  0x3d   : > { %3059 = vst [vmem:[#allocation5_spill] sm:$0xff] %v1725_v4  ;;  %3060 = vst [vmem:[#allocation6_spill] sm:$0xff] %v1728_v51  ;;  %v1738_v49 = vld [vmem:[%s1581_s15 + $0x1d0] sm:$0xff]   ;;  %v1745_v63 = vld [vmem:[%s1581_s15 + $0x1d8] sm:$0xff]   ;;  %v3150_v51 = vunpack.c.l.bf16 %v1688_v1 }
  0x3e   : > { %3061 = vst [vmem:[#allocation7_spill] sm:$0xff] %v1735_v2  ;;  %3062 = vst [vmem:[#allocation8_spill] sm:$0xff] %v1738_v49  ;;  %v1748_v45 = vld [vmem:[%s1581_s15 + $0x1e0] sm:$0xff]   ;;  %v1755_v5 = vld [vmem:[%s1581_s15 + $0x1e8] sm:$0xff]   ;;  %v3148_v2 = vunpack.c.l.bf16 %v1685_v0 }
  0x3f   : > { %3063 = vst [vmem:[#allocation9_spill] sm:$0xff] %v1745_v63  ;;  %3064 = vst [vmem:[#allocation10_spill] sm:$0xff] %v1748_v45  ;;  %v1758_v43 = vld [vmem:[%s1581_s15 + $0x1f0] sm:$0xff]   ;;  %v1765_v60 = vld [vmem:[%s1581_s15 + $0x1f8] sm:$0xff]  }
  0x40   : > { %3065 = vst [vmem:[#allocation11_spill] sm:$0xff] %v1755_v5  ;;  %3066 = vst [vmem:[#allocation12_spill] sm:$0xff] %v1758_v43  ;;  %v1768_v39 = vld [vmem:[%s1581_s15 + $0x200] sm:$0xff]   ;;  %v1775_v56 = vld [vmem:[%s1581_s15 + $0x208] sm:$0xff]   ;;  %v3140_v43 = vunpack.c.l.bf16 %v1665_v52  ;;  %v3142_v5 = vunpack.c.l.bf16 %v1668_v53 }
  0x41   : > { %3067 = vst [vmem:[#allocation13_spill] sm:$0xff] %v1765_v60  ;;  %3068 = vst [vmem:[#allocation14_spill] sm:$0xff] %v1768_v39  ;;  %v1778_v37 = vld [vmem:[%s1581_s15 + $0x210] sm:$0xff]   ;;  %v1785_v54 = vld [vmem:[%s1581_s15 + $0x218] sm:$0xff]  }
  0x42   : > { %3069 = vst [vmem:[#allocation15_spill] sm:$0xff] %v1775_v56  ;;  %3070 = vst [vmem:[#allocation16_spill] sm:$0xff] %v1778_v37  ;;  %v1788_v33 = vld [vmem:[%s1581_s15 + $0x220] sm:$0xff]   ;;  %v1795_v50 = vld [vmem:[%s1581_s15 + $0x228] sm:$0xff]   ;;  %v3132_v37 = vunpack.c.l.bf16 %v1645_v40  ;;  %v3134_v56 = vunpack.c.l.bf16 %v1648_v41 }
  0x43   : > { %3071 = vst [vmem:[#allocation17_spill] sm:$0xff] %v1785_v54  ;;  %3072 = vst [vmem:[#allocation18_spill] sm:$0xff] %v1788_v33  ;;  %v1798_v31 = vld [vmem:[%s1581_s15 + $0x230] sm:$0xff]   ;;  %v1805_v48 = vld [vmem:[%s1581_s15 + $0x238] sm:$0xff]   ;;  %v3130_v54 = vunpack.c.l.bf16 %v1638_v35 }
  0x44   : > { %3073 = vst [vmem:[#allocation19_spill] sm:$0xff] %v1795_v50  ;;  %3074 = vst [vmem:[#allocation20_spill] sm:$0xff] %v1798_v31  ;;  %v1808_v27 = vld [vmem:[%s1581_s15 + $0x240] sm:$0xff]   ;;  %v1815_v44 = vld [vmem:[%s1581_s15 + $0x248] sm:$0xf]  ;;  %v3121_v31 = vunpack.c.h.bf16 %v1615_v22 }
  0x45   : > { %3075 = vst [vmem:[#allocation21_spill] sm:$0xff] %v1805_v48  ;;  %3076 = vst [vmem:[#allocation22_spill] sm:$0xff] %v1808_v27  ;;  %v1818_v25 = vld [vmem:[%s1581_s15 + $0xc0] sm:$0xff]   ;;  %v1825_v42 = vld [vmem:[%s1581_s15 + $0xc8] sm:$0xff]  }
  0x46   : > { %3077 = vst [vmem:[#allocation23_spill] sm:$0xff] %v1815_v44  ;;  %3078 = vst [vmem:[#allocation24_spill] sm:$0xff] %v1818_v25  ;;  %v1828_v21 = vld [vmem:[%s1581_s15 + $0xd0] sm:$0xff]   ;;  %v1835_v38 = vld [vmem:[%s1581_s15 + $0xd8] sm:$0xff]  }
  0x47   : > { %3079 = vst [vmem:[#allocation25_spill] sm:$0xff] %v1825_v42  ;;  %3080 = vst [vmem:[#allocation26_spill] sm:$0xff] %v1828_v21  ;;  %v1838_v19 = vld [vmem:[%s1581_s15 + $0xe0] sm:$0xff]   ;;  %v1845_v36 = vld [vmem:[%s1581_s15 + $0xe8] sm:$0xff]  }
  0x48   : > { %3081 = vst [vmem:[#allocation27_spill] sm:$0xff] %v1835_v38  ;;  %3082 = vst [vmem:[#allocation28_spill] sm:$0xff] %v1838_v19  ;;  %v1848_v15 = vld [vmem:[%s1581_s15 + $0xf0] sm:$0xff]   ;;  %v1855_v32 = vld [vmem:[%s1581_s15 + $0xf8] sm:$0xff]  }
  0x49   : > { %3083 = vst [vmem:[#allocation29_spill] sm:$0xff] %v1845_v36  ;;  %3084 = vst [vmem:[#allocation30_spill] sm:$0xff] %v1848_v15  ;;  %v1858_v13 = vld [vmem:[%s1581_s15 + $0x100] sm:$0xff]   ;;  %v1865_v30 = vld [vmem:[%s1581_s15 + $0x108] sm:$0xff]   ;;  %v3108_v15 = vunpack.c.l.bf16 %v1590_v9 }
  0x4a   : > { %3085 = vst [vmem:[#allocation31_spill] sm:$0xff] %v1855_v32  ;;  %3086 = vst [vmem:[#allocation32_spill] sm:$0xff] %v1858_v13  ;;  %v1868_v42 = vld [vmem:[%s1581_s15 + $0x110] sm:$0xff]   ;;  %v1875_v26 = vld [vmem:[%s1581_s15 + $0x118] sm:$0xff]  }
  0x4b   : > { %3087 = vst [vmem:[#allocation33_spill] sm:$0xff] %v1865_v30  ;;  %3088 = vst [vmem:[#allocation34_spill] sm:$0xff] %v1868_v42  ;;  %v1878_v38 = vld [vmem:[%s1581_s15 + $0x120] sm:$0xff]   ;;  %v1885_v24 = vld [vmem:[%s1581_s15 + $0x128] sm:$0xff]   ;;  %v3105_v42 = vunpack.c.h.bf16 %v1584_v7 }
  0x4c   : > { %3089 = vst [vmem:[#allocation35_spill] sm:$0xff] %v1875_v26  ;;  %3090 = vst [vmem:[#allocation36_spill] sm:$0xff] %v1878_v38  ;;  %v1888_v36 = vld [vmem:[%s1581_s15 + $0x130] sm:$0xff]   ;;  %v1895_v20 = vld [vmem:[%s1581_s15 + $0x138] sm:$0xff]  }
  0x4d   : > { %3091 = vst [vmem:[#allocation37_spill] sm:$0xff] %v1885_v24  ;;  %3092 = vst [vmem:[#allocation38_spill] sm:$0xff] %v1888_v36  ;;  %v1898_v32 = vld [vmem:[%s1581_s15 + $0x140] sm:$0xff]   ;;  %v1905_v18 = vld [vmem:[%s1581_s15 + $0x148] sm:$0xff]   ;;  %v3106_v24 = vunpack.c.l.bf16 %v1587_v8 }
  0x4e   : > { %3093 = vst [vmem:[#allocation39_spill] sm:$0xff] %v1895_v20  ;;  %3094 = vst [vmem:[#allocation40_spill] sm:$0xff] %v1898_v32  ;;  %v1908_v30 = vld [vmem:[%s1581_s15 + $0x150] sm:$0xff]   ;;  %v1915_v14 = vld [vmem:[%s1581_s15 + $0x158] sm:$0xff]   ;;  %v3104_v32 = vunpack.c.l.bf16 %v1584_v7  ;;  %v3110_v7 = vunpack.c.l.bf16 %v1593_v10 }
  0x4f   : > { %3095 = vst [vmem:[#allocation41_spill] sm:$0xff] %v1905_v18  ;;  %3096 = vst [vmem:[#allocation42_spill] sm:$0xff] %v1908_v30  ;;  %v1918_v26 = vld [vmem:[%s1581_s15 + $0x160] sm:$0xff]   ;;  %v1925_v44 = vld [vmem:[%s1581_s15 + $0x168] sm:$0xff]   ;;  %v3107_v18 = vunpack.c.h.bf16 %v1587_v8  ;;  %v3112_v8 = vunpack.c.l.bf16 %v1596_v11 }
  0x50   : > { %3097 = vst [vmem:[#allocation43_spill] sm:$0xff] %v1915_v14  ;;  %3098 = vst [vmem:[#allocation44_spill] sm:$0xff] %v1918_v26  ;;  %v1928_v25 = vld [vmem:[%s1581_s15 + $0x170] sm:$0xff]   ;;  %v1935_v27 = vld [vmem:[%s1581_s15 + $0x178] sm:$0xff]   ;;  %v3115_v26 = vunpack.c.h.bf16 %v1599_v12 }
  0x51   : > { %3099 = vst [vmem:[#allocation45_spill] sm:$0xff] %v1925_v44  ;;  %3100 = vst [vmem:[#allocation46_spill] sm:$0xff] %v1928_v25  ;;  %v1938_v13 = vld [vmem:[%s1581_s15 + $0x180] sm:$0xff]   ;;  %v3113_v44 = vunpack.c.h.bf16 %v1596_v11  ;;  %v3118_v11 = vunpack.c.l.bf16 %v1608_v17 }
  0x52   : > { %3101 = vst [vmem:[#allocation47_spill] sm:$0xff] %v1935_v27  ;;  %3102 = vst [vmem:[#allocation48_spill] sm:$0xff] %v1938_v13  ;;  %v3109_v13 = vunpack.c.h.bf16 %v1590_v9  ;;  %v3111_v27 = vunpack.c.h.bf16 %v1593_v10  ;;  %v3114_v9 = vunpack.c.l.bf16 %v1599_v12  ;;  %v3116_v10 = vunpack.c.l.bf16 %v1605_v16 }
  0x53   : > { %v3120_v12 = vunpack.c.l.bf16 %v1615_v22  ;;  %v3126_v22 = vunpack.c.l.bf16 %v1628_v29 }
  0xad   : > { %v1948_v30 = vpop.permute.xlu0 %499  ;;  %v1990_v14 = vpop.permute.xlu1 %507 }
  0xae   : > { %3103 = vst [vmem:[#allocation49_spill] sm:$0xff] %v1948_v30  ;;  %v510_v19 = vmul.f32 %v3104_v32, %v1948_v30  ;;  %v511_v36 = vmul.f32 %v3105_v42, %v1948_v30  ;;  %v512_v25 = vmul.f32 %v3106_v24, %v1948_v30  ;;  %v513_v38 = vmul.f32 %v3107_v18, %v1948_v30 }
  0xaf   : > { %v514_v21 = vmul.f32 %v3108_v15, %v1948_v30  ;;  %v515_v32 = vmul.f32 %v3109_v13, %v1948_v30  ;;  %v516_v42 = vmul.f32 %v3110_v7, %v1948_v30  ;;  %v517_v24 = vmul.f32 %v3111_v27, %v1948_v30 }
  0xb0   : > { %v518_v18 = vmul.f32 %v3112_v8, %v1948_v30  ;;  %v519_v15 = vmul.f32 %v3113_v44, %v1948_v30  ;;  %v520_v13 = vmul.f32 %v3114_v9, %v1948_v30  ;;  %v521_v7 = vmul.f32 %v3115_v26, %v1948_v30 }
  0xb1   : > { %v522_v27 = vmul.f32 %v3116_v10, %v1948_v30  ;;  %v3117_v8 = vunpack.c.h.bf16 %v1605_v16  ;;  %v524_v44 = vmul.f32 %v3118_v11, %v1948_v30  ;;  %v3119_v9 = vunpack.c.h.bf16 %v1608_v17  ;;  %v2117_v45 = vpop.permute.xlu1 %676 }
  0xb2   : > { %v526_v26 = vmul.f32 %v3120_v12, %v1948_v30  ;;  %v527_v10 = vmul.f32 %v3121_v31, %v1948_v30  ;;  %v3122_v16 = vunpack.c.l.bf16 %v1618_v23  ;;  %v3123_v11 = vunpack.c.h.bf16 %v1618_v23 }
  0xb3   : > { %v523_v20 = vmul.f32 %v3117_v8, %v1948_v30  ;;  %v525_v48 = vmul.f32 %v3119_v9, %v1948_v30  ;;  %v3124_v17 = vunpack.c.l.bf16 %v1625_v28  ;;  %v3125_v12 = vunpack.c.h.bf16 %v1625_v28 }
  0xb4   : > { %v528_v8 = vmul.f32 %v3122_v16, %v1948_v30  ;;  %v529_v50 = vmul.f32 %v3123_v11, %v1948_v30  ;;  %v2029_v31 = vmul.f32 %v3126_v22, %v1948_v30  ;;  %v3127_v16 = vunpack.c.h.bf16 %v1628_v29 }
  0xb5   : > { %v2019_v9 = vmul.f32 %v3124_v17, %v1948_v30  ;;  %v2024_v33 = vmul.f32 %v3125_v12, %v1948_v30  ;;  %v3128_v11 = vunpack.c.l.bf16 %v1635_v34  ;;  %v3129_v28 = vunpack.c.h.bf16 %v1635_v34 }
  0xb6   : > { %v2034_v23 = vmul.f32 %v3127_v16, %v1948_v30  ;;  %v2049_v22 = vmul.f32 %v3130_v54, %v1948_v30  ;;  %v3131_v29 = vunpack.c.h.bf16 %v1638_v35  ;;  %v3133_v34 = vunpack.c.h.bf16 %v1645_v40 }
  0xb7   : > { %v2039_v17 = vmul.f32 %v3128_v11, %v1948_v30  ;;  %v2044_v12 = vmul.f32 %v3129_v28, %v1948_v30  ;;  %v2059_v11 = vmul.f32 %v3132_v37, %v1948_v30  ;;  %v2069_v54 = vmul.f32 %v3134_v56, %v1948_v30 }
  0xb8   : > { %v2054_v16 = vmul.f32 %v3131_v29, %v1948_v30  ;;  %v2064_v28 = vmul.f32 %v3133_v34, %v1948_v30  ;;  %v3135_v35 = vunpack.c.h.bf16 %v1648_v41  ;;  %v3136_v37 = vunpack.c.l.bf16 %v1655_v46 }
  0xb9   : > { %v3137_v40 = vunpack.c.h.bf16 %v1655_v46  ;;  %v3138_v56 = vunpack.c.l.bf16 %v1658_v47  ;;  %v3139_v41 = vunpack.c.h.bf16 %v1658_v47  ;;  %v3141_v46 = vunpack.c.h.bf16 %v1665_v52 }
  0xba   : > { %v2074_v29 = vmul.f32 %v3135_v35, %v1948_v30  ;;  %v2080_v39 = vmul.f32 %v3136_v37, %v1948_v30  ;;  %v2100_v37 = vmul.f32 %v3140_v43, %v1948_v30  ;;  %v3143_v47 = vunpack.c.h.bf16 %v1668_v53 }
  0xbb   : > { %v2085_v34 = vmul.f32 %v3137_v40, %v1948_v30  ;;  %v2090_v60 = vmul.f32 %v3138_v56, %v1948_v30  ;;  %v2095_v35 = vmul.f32 %v3139_v41, %v1948_v30  ;;  %v2105_v40 = vmul.f32 %v3141_v46, %v1948_v30 }
  0xbc   : > { %v2110_v56 = vmul.f32 %v3142_v5, %v1948_v30  ;;  %v2115_v41 = vmul.f32 %v3143_v47, %v1948_v30  ;;  %v3144_v43 = vunpack.c.l.bf16 %v1675_v58  ;;  %v3145_v52 = vunpack.c.h.bf16 %v1675_v58 }
  0xbd   : > { %v3146_v5 = vunpack.c.l.bf16 %v1678_v59  ;;  %v3147_v53 = vunpack.c.h.bf16 %v1678_v59  ;;  %v3149_v58 = vunpack.c.h.bf16 %v1685_v0  ;;  %v3151_v59 = vunpack.c.h.bf16 %v1688_v1 }
  0xbe   : > { %v2122_v63 = vmul.f32 %v3144_v43, %v1948_v30  ;;  %v2127_v46 = vmul.f32 %v3145_v52, %v1948_v30  ;;  %v2142_v43 = vmul.f32 %v3148_v2, %v1948_v30  ;;  %v687_v0 = vadd.f32 %v2117_v45, %v510_v19 }
  0xbf   : > { %v2132_v49 = vmul.f32 %v3146_v5, %v1948_v30  ;;  %v2137_v47 = vmul.f32 %v3147_v53, %v1948_v30  ;;  %v2147_v52 = vmul.f32 %v3149_v58, %v1948_v30  ;;  %v2152_v5 = vmul.f32 %v3150_v51, %v1948_v30 }
  0xc0   : > { %v2157_v53 = vmul.f32 %v3151_v59, %v1948_v30  ;;  %v688_v2 = vadd.f32 %v2117_v45, %v511_v36  ;;  %v689_v51 = vadd.f32 %v2117_v45, %v512_v25  ;;  %v690_v58 = vadd.f32 %v2117_v45, %v513_v38  ;;  %834 = vst [vmem:[%s2162_s18] sm:$0xff] %v687_v0 }
  0xc1   : > { %v691_v1 = vadd.f32 %v2117_v45, %v514_v21  ;;  %v692_v59 = vadd.f32 %v2117_v45, %v515_v32  ;;  %v693_v30 = vadd.f32 %v2117_v45, %v516_v42  ;;  %v694_v4 = vadd.f32 %v2117_v45, %v517_v24 }
  0xc2   : > { %v695_v19 = vadd.f32 %v2117_v45, %v518_v18  ;;  %v696_v36 = vadd.f32 %v2117_v45, %v519_v15  ;;  %v697_v25 = vadd.f32 %v2117_v45, %v520_v13  ;;  %v698_v38 = vadd.f32 %v2117_v45, %v521_v7  ;;  %835 = vst [vmem:[%s2162_s18 + $0x8] sm:$0xff] %v688_v2 }
  0xc3   : > { %836 = vst [vmem:[%s2162_s18 + $0x10] sm:$0xff] %v689_v51  ;;  %837 = vst [vmem:[%s2162_s18 + $0x18] sm:$0xff] %v690_v58  ;;  %v699_v21 = vadd.f32 %v2117_v45, %v522_v27  ;;  %v700_v32 = vadd.f32 %v2117_v45, %v523_v20  ;;  %v701_v42 = vadd.f32 %v2117_v45, %v524_v44  ;;  %v3158_v2 = vunpack.c.l.bf16 %v1708_v57 }
  0xc4   : > { %v702_v24 = vadd.f32 %v2117_v45, %v525_v48  ;;  %838 = vst [vmem:[%s2162_s18 + $0x20] sm:$0xff] %v691_v1  ;;  %839 = vst [vmem:[%s2162_s18 + $0x28] sm:$0xff] %v692_v59  ;;  %v703_v18 = vadd.f32 %v2117_v45, %v526_v26  ;;  %v704_v15 = vadd.f32 %v2117_v45, %v527_v10  ;;  %v3160_v1 = vunpack.c.l.bf16 %v1715_v62 }
  0xc5   : > { %840 = vst [vmem:[%s2162_s18 + $0x30] sm:$0xff] %v693_v30  ;;  %841 = vst [vmem:[%s2162_s18 + $0x38] sm:$0xff] %v694_v4  ;;  %v705_v13 = vadd.f32 %v2117_v45, %v528_v8  ;;  %v706_v20 = vadd.f32 %v2117_v45, %v529_v50  ;;  %v707_v30 = vadd.f32 %v2117_v45, %v2019_v9 }
  0xc6   : > { %842 = vst [vmem:[%s2162_s18 + $0x40] sm:$0xff] %v695_v19  ;;  %843 = vst [vmem:[%s2162_s18 + $0x48] sm:$0xff] %v696_v36  ;;  %v708_v48 = vadd.f32 %v2117_v45, %v2024_v33  ;;  %v709_v4 = vadd.f32 %v2117_v45, %v2029_v31  ;;  %v710_v50 = vadd.f32 %v2117_v45, %v2034_v23  ;;  %v3161_v19 = vunpack.c.h.bf16 %v1715_v62 }
  0xc7   : > { %844 = vst [vmem:[%s2162_s18 + $0x50] sm:$0xff] %v697_v25  ;;  %845 = vst [vmem:[%s2162_s18 + $0x58] sm:$0xff] %v698_v38  ;;  %v711_v7 = vadd.f32 %v2117_v45, %v2039_v17  ;;  %v712_v33 = vadd.f32 %v2117_v45, %v2044_v12  ;;  %v713_v27 = vadd.f32 %v2117_v45, %v2049_v22  ;;  %v3163_v38 = vunpack.c.h.bf16 %v1718_v55 }
  0xc8   : > { %846 = vst [vmem:[%s2162_s18 + $0x60] sm:$0xff] %v699_v21  ;;  %847 = vst [vmem:[%s2162_s18 + $0x68] sm:$0xff] %v700_v32  ;;  %v714_v44 = vadd.f32 %v2117_v45, %v2054_v16  ;;  %v715_v26 = vadd.f32 %v2117_v45, %v2059_v11  ;;  %v716_v10 = vadd.f32 %v2117_v45, %v2064_v28  ;;  %v3164_v32 = vld [vmem:[#allocation5_spill] sm:$0xff] }
  0xc9   : > { %848 = vst [vmem:[%s2162_s18 + $0x70] sm:$0xff] %v701_v42  ;;  %849 = vst [vmem:[%s2162_s18 + $0x78] sm:$0xff] %v702_v24  ;;  %v717_v8 = vadd.f32 %v2117_v45, %v2069_v54  ;;  %v718_v9 = vadd.f32 %v2117_v45, %v2074_v29  ;;  %v719_v31 = vadd.f32 %v2117_v45, %v2080_v39  ;;  %v3166_v24 = vunpack.c.h.bf16 %v3164_v32 }
  0xca   : > { %850 = vst [vmem:[%s2162_s18 + $0x80] sm:$0xff] %v703_v18  ;;  %851 = vst [vmem:[%s2162_s18 + $0x88] sm:$0xff] %v704_v15  ;;  %v720_v23 = vadd.f32 %v2117_v45, %v2085_v34  ;;  %v721_v17 = vadd.f32 %v2117_v45, %v2090_v60  ;;  %v722_v12 = vadd.f32 %v2117_v45, %v2095_v35  ;;  %v3167_v15 = vld [vmem:[#allocation6_spill] sm:$0xff] }
  0xcb   : > { %852 = vst [vmem:[%s2162_s18 + $0x90] sm:$0xff] %v705_v13  ;;  %853 = vst [vmem:[%s2162_s18 + $0x98] sm:$0xff] %v706_v20  ;;  %v723_v39 = vadd.f32 %v2117_v45, %v2100_v37  ;;  %v724_v22 = vadd.f32 %v2117_v45, %v2105_v40  ;;  %v725_v60 = vadd.f32 %v2117_v45, %v2110_v56  ;;  %v3152_v37 = vunpack.c.l.bf16 %v1695_v6 }
  0xcc   : > { %854 = vst [vmem:[%s2162_s18 + $0xa0] sm:$0xff] %v707_v30  ;;  %855 = vst [vmem:[%s2162_s18 + $0xa8] sm:$0xff] %v708_v48  ;;  %v726_v16 = vadd.f32 %v2117_v45, %v2115_v41  ;;  %v727_v11 = vadd.f32 %v2117_v45, %v2122_v63  ;;  %v728_v28 = vadd.f32 %v2117_v45, %v2127_v46  ;;  %v3153_v56 = vunpack.c.h.bf16 %v1695_v6  ;;  %v3170_v48 = vld [vmem:[#allocation7_spill] sm:$0xff] }
  0xcd   : > { %856 = vst [vmem:[%s2162_s18 + $0xb0] sm:$0xff] %v709_v4  ;;  %857 = vst [vmem:[%s2162_s18 + $0xb8] sm:$0xff] %v710_v50  ;;  %v729_v54 = vadd.f32 %v2117_v45, %v2132_v49  ;;  %v730_v29 = vadd.f32 %v2117_v45, %v2137_v47  ;;  %v731_v63 = vadd.f32 %v2117_v45, %v2142_v43  ;;  %v3154_v46 = vunpack.c.l.bf16 %v1698_v61 }
  0xce   : > { %858 = vst [vmem:[%s2162_s18 + $0xc0] sm:$0xff] %v711_v7  ;;  %859 = vst [vmem:[%s2162_s18 + $0xc8] sm:$0xff] %v712_v33  ;;  %v732_v34 = vadd.f32 %v2117_v45, %v2147_v52  ;;  %v733_v49 = vadd.f32 %v2117_v45, %v2152_v5  ;;  %v734_v35 = vadd.f32 %v2117_v45, %v2157_v53  ;;  %v3155_v43 = vunpack.c.h.bf16 %v1698_v61  ;;  %v3173_v33 = vld [vmem:[#allocation8_spill] sm:$0xff] }
  0xcf   : > { %860 = vst [vmem:[%s2162_s18 + $0xd0] sm:$0xff] %v713_v27  ;;  %861 = vst [vmem:[%s2162_s18 + $0xd8] sm:$0xff] %v714_v44  ;;  %v608_v40 = vmul.f32 %v3152_v37, %v1990_v14  ;;  %v609_v41 = vmul.f32 %v3153_v56, %v1990_v14  ;;  %v610_v47 = vmul.f32 %v3154_v46, %v1990_v14  ;;  %v3156_v5 = vunpack.c.l.bf16 %v1705_v3  ;;  %v3188_v46 = vld [vmem:[#allocation13_spill] sm:$0xff] }
  0xd0   : > { %862 = vst [vmem:[%s2162_s18 + $0xe0] sm:$0xff] %v715_v26  ;;  %863 = vst [vmem:[%s2162_s18 + $0xe8] sm:$0xff] %v716_v10  ;;  %v611_v52 = vmul.f32 %v3155_v43, %v1990_v14  ;;  %v3157_v6 = vunpack.c.h.bf16 %v1705_v3  ;;  %v614_v51 = vmul.f32 %v3158_v2, %v1990_v14  ;;  %v3159_v61 = vunpack.c.h.bf16 %v1708_v57 }
  0xd1   : > { %864 = vst [vmem:[%s2162_s18 + $0xf0] sm:$0xff] %v717_v8  ;;  %865 = vst [vmem:[%s2162_s18 + $0xf8] sm:$0xff] %v718_v9  ;;  %v612_v53 = vmul.f32 %v3156_v5, %v1990_v14  ;;  %v616_v59 = vmul.f32 %v3160_v1, %v1990_v14  ;;  %v617_v36 = vmul.f32 %v3161_v19, %v1990_v14  ;;  %v3162_v3 = vunpack.c.l.bf16 %v1718_v55  ;;  %v3176_v8 = vld [vmem:[#allocation9_spill] sm:$0xff] }
  0xd2   : > { %866 = vst [vmem:[%s2162_s18 + $0x100] sm:$0xff] %v719_v31  ;;  %867 = vst [vmem:[%s2162_s18 + $0x108] sm:$0xff] %v720_v23  ;;  %v613_v0 = vmul.f32 %v3157_v6, %v1990_v14  ;;  %v615_v58 = vmul.f32 %v3159_v61, %v1990_v14  ;;  %v619_v21 = vmul.f32 %v3163_v38, %v1990_v14  ;;  %v3165_v57 = vunpack.c.l.bf16 %v3164_v32  ;;  %v3191_v61 = vld [vmem:[#allocation14_spill] sm:$0xff]  ;;  %v3194_v32 = vld [vmem:[#allocation15_spill] sm:$0xff] }
  0xd3   : > { %868 = vst [vmem:[%s2162_s18 + $0x110] sm:$0xff] %v721_v17  ;;  %869 = vst [vmem:[%s2162_s18 + $0x118] sm:$0xff] %v722_v12  ;;  %v618_v25 = vmul.f32 %v3162_v3, %v1990_v14  ;;  %v621_v18 = vmul.f32 %v3166_v24, %v1990_v14  ;;  %v3168_v62 = vunpack.c.l.bf16 %v3167_v15  ;;  %v3169_v20 = vunpack.c.h.bf16 %v3167_v15  ;;  %v3179_v12 = vld [vmem:[#allocation10_spill] sm:$0xff] }
  0xd4   : > { %870 = vst [vmem:[%s2162_s18 + $0x120] sm:$0xff] %v723_v39  ;;  %871 = vst [vmem:[%s2162_s18 + $0x128] sm:$0xff] %v724_v22  ;;  %v620_v42 = vmul.f32 %v3165_v57, %v1990_v14  ;;  %v3171_v55 = vunpack.c.l.bf16 %v3170_v48  ;;  %v3172_v50 = vunpack.c.h.bf16 %v3170_v48  ;;  %v3174_v27 = vunpack.c.l.bf16 %v3173_v33 }
  0xd5   : > { %872 = vst [vmem:[%s2162_s18 + $0x130] sm:$0xff] %v725_v60  ;;  %873 = vst [vmem:[%s2162_s18 + $0x138] sm:$0xff] %v726_v16  ;;  %v622_v13 = vmul.f32 %v3168_v62, %v1990_v14  ;;  %v623_v30 = vmul.f32 %v3169_v20, %v1990_v14  ;;  %v3175_v26 = vunpack.c.h.bf16 %v3173_v33  ;;  %v3177_v9 = vunpack.c.l.bf16 %v3176_v8  ;;  %v3197_v20 = vld [vmem:[#allocation16_spill] sm:$0xff] }
  0xd6   : > { %874 = vst [vmem:[%s2162_s18 + $0x140] sm:$0xff] %v727_v11  ;;  %875 = vst [vmem:[%s2162_s18 + $0x148] sm:$0xff] %v728_v28  ;;  %v624_v4 = vmul.f32 %v3171_v55, %v1990_v14  ;;  %v625_v7 = vmul.f32 %v3172_v50, %v1990_v14  ;;  %v626_v44 = vmul.f32 %v3174_v27, %v1990_v14  ;;  %v3178_v23 = vunpack.c.h.bf16 %v3176_v8  ;;  %v3182_v11 = vld [vmem:[#allocation11_spill] sm:$0xff]  ;;  %v2422_v27 = vpop.permute.xlu1 %684 }
  0xd7   : > { %876 = vst [vmem:[%s2162_s18 + $0x150] sm:$0xff] %v729_v54  ;;  %877 = vst [vmem:[%s2162_s18 + $0x158] sm:$0xff] %v730_v29  ;;  %v627_v10 = vmul.f32 %v3175_v26, %v1990_v14  ;;  %v628_v31 = vmul.f32 %v3177_v9, %v1990_v14  ;;  %v3180_v39 = vunpack.c.l.bf16 %v3179_v12  ;;  %v3181_v60 = vunpack.c.h.bf16 %v3179_v12  ;;  %v3200_v26 = vld [vmem:[#allocation17_spill] sm:$0xff] }
  0xd8   : > { %878 = vst [vmem:[%s2162_s18 + $0x160] sm:$0xff] %v731_v63  ;;  %879 = vst [vmem:[%s2162_s18 + $0x168] sm:$0xff] %v732_v34  ;;  %v629_v17 = vmul.f32 %v3178_v23, %v1990_v14  ;;  %v3183_v28 = vunpack.c.l.bf16 %v3182_v11  ;;  %v3184_v29 = vunpack.c.h.bf16 %v3182_v11  ;;  %v3185_v34 = vld [vmem:[#allocation12_spill] sm:$0xff]  ;;  %v3189_v43 = vunpack.c.l.bf16 %v3188_v46 }
  0xd9   : > { %880 = vst [vmem:[%s2162_s18 + $0x170] sm:$0xff] %v733_v49  ;;  %881 = vst [vmem:[%s2162_s18 + $0x178] sm:$0xff] %v734_v35  ;;  %v630_v22 = vmul.f32 %v3180_v39, %v1990_v14  ;;  %v2360_v16 = vmul.f32 %v3181_v60, %v1990_v14  ;;  %v3186_v49 = vunpack.c.l.bf16 %v3185_v34  ;;  %v3187_v37 = vunpack.c.h.bf16 %v3185_v34  ;;  %v3203_v39 = vld [vmem:[#allocation18_spill] sm:$0xff]  ;;  %v3206_v34 = vld [vmem:[#allocation19_spill] sm:$0xff] }
  0xda   : > { %v2365_v54 = vmul.f32 %v3183_v28, %v1990_v14  ;;  %v2370_v63 = vmul.f32 %v3184_v29, %v1990_v14  ;;  %v2385_v5 = vmul.f32 %v3189_v43, %v1990_v14  ;;  %v3190_v6 = vunpack.c.h.bf16 %v3188_v46 }
  0xdb   : > { %v2375_v35 = vmul.f32 %v3186_v49, %v1990_v14  ;;  %v2380_v56 = vmul.f32 %v3187_v37, %v1990_v14  ;;  %v3192_v1 = vunpack.c.l.bf16 %v3191_v61  ;;  %v3193_v3 = vunpack.c.h.bf16 %v3191_v61 }
  0xdc   : > { %v2390_v2 = vmul.f32 %v3190_v6, %v1990_v14  ;;  %v3195_v57 = vunpack.c.l.bf16 %v3194_v32  ;;  %v3196_v15 = vunpack.c.h.bf16 %v3194_v32  ;;  %v3198_v48 = vunpack.c.l.bf16 %v3197_v20  ;;  %v3209_v6 = vld [vmem:[#allocation20_spill] sm:$0xff] }
  0xdd   : > { %v2395_v19 = vmul.f32 %v3192_v1, %v1990_v14  ;;  %v2400_v38 = vmul.f32 %v3193_v3, %v1990_v14  ;;  %v3199_v50 = vunpack.c.h.bf16 %v3197_v20  ;;  %v3201_v8 = vunpack.c.l.bf16 %v3200_v26 }
  0xde   : > { %v2405_v24 = vmul.f32 %v3195_v57, %v1990_v14  ;;  %v2410_v62 = vmul.f32 %v3196_v15, %v1990_v14  ;;  %v2415_v55 = vmul.f32 %v3198_v48, %v1990_v14  ;;  %v3202_v23 = vunpack.c.h.bf16 %v3200_v26  ;;  %v3212_v57 = vld [vmem:[#allocation21_spill] sm:$0xff]  ;;  %v3215_v26 = vld [vmem:[#allocation22_spill] sm:$0xff] }
  0xdf   : > { %v2420_v33 = vmul.f32 %v3199_v50, %v1990_v14  ;;  %v2427_v9 = vmul.f32 %v3201_v8, %v1990_v14  ;;  %v3204_v60 = vunpack.c.l.bf16 %v3203_v39  ;;  %v3205_v28 = vunpack.c.h.bf16 %v3203_v39 }
  0xe0   : > { %v2432_v12 = vmul.f32 %v3202_v23, %v1990_v14  ;;  %v3207_v49 = vunpack.c.l.bf16 %v3206_v34  ;;  %v3208_v46 = vunpack.c.h.bf16 %v3206_v34  ;;  %v3210_v61 = vunpack.c.l.bf16 %v3209_v6 }
  0xe1   : > { %v2437_v11 = vmul.f32 %v3204_v60, %v1990_v14  ;;  %v2442_v29 = vmul.f32 %v3205_v28, %v1990_v14  ;;  %v3211_v3 = vunpack.c.h.bf16 %v3209_v6  ;;  %v3213_v15 = vunpack.c.l.bf16 %v3212_v57  ;;  %v3218_v28 = vld [vmem:[#allocation23_spill] sm:$0xff] }
  0xe2   : > { %v2447_v37 = vmul.f32 %v3207_v49, %v1990_v14  ;;  %v2452_v43 = vmul.f32 %v3208_v46, %v1990_v14  ;;  %v2457_v1 = vmul.f32 %v3210_v61, %v1990_v14  ;;  %v3214_v48 = vunpack.c.h.bf16 %v3212_v57 }
  0xe3   : > { %v2462_v32 = vmul.f32 %v3211_v3, %v1990_v14  ;;  %v2467_v20 = vmul.f32 %v3213_v15, %v1990_v14  ;;  %v3216_v8 = vunpack.c.l.bf16 %v3215_v26  ;;  %v3217_v39 = vunpack.c.h.bf16 %v3215_v26 }
  0xe4   : > { %v2472_v50 = vmul.f32 %v3214_v48, %v1990_v14  ;;  %v3219_v34 = vunpack.c.l.bf16 %v3218_v28  ;;  %v785_v46 = vadd.f32 %v2422_v27, %v608_v40  ;;  %v786_v6 = vadd.f32 %v2422_v27, %v609_v41 }
  0xe5   : > { %v2477_v23 = vmul.f32 %v3216_v8, %v1990_v14  ;;  %v2482_v60 = vmul.f32 %v3217_v39, %v1990_v14  ;;  %v787_v61 = vadd.f32 %v2422_v27, %v610_v47  ;;  %v788_v3 = vadd.f32 %v2422_v27, %v611_v52 }
  0xe6   : > { %v2487_v49 = vmul.f32 %v1990_v14, %v3219_v34  ;;  %v789_v57 = vadd.f32 %v2422_v27, %v612_v53  ;;  %v790_v15 = vadd.f32 %v2422_v27, %v613_v0  ;;  %v791_v48 = vadd.f32 %v2422_v27, %v614_v51  ;;  %932 = vst [vmem:[%s2162_s18 + $0x310] sm:$0xff] %v785_v46  ;;  %v3227_v34 = vld [vmem:[#allocation26_spill] sm:$0xff] }
  0xe7   : > { %v792_v14 = vadd.f32 %v2422_v27, %v615_v58  ;;  %v793_v40 = vadd.f32 %v2422_v27, %v616_v59  ;;  %v794_v41 = vadd.f32 %v2422_v27, %v617_v36  ;;  %v795_v47 = vadd.f32 %v2422_v27, %v618_v25  ;;  %933 = vst [vmem:[%s2162_s18 + $0x318] sm:$0xff] %v786_v6 }
  0xe8   : > { %934 = vst [vmem:[%s2162_s18 + $0x320] sm:$0xff] %v787_v61  ;;  %v796_v52 = vadd.f32 %v2422_v27, %v619_v21  ;;  %v797_v53 = vadd.f32 %v2422_v27, %v620_v42  ;;  %v798_v0 = vadd.f32 %v2422_v27, %v621_v18  ;;  %v799_v51 = vadd.f32 %v2422_v27, %v622_v13 }
  0xe9   : > { %935 = vst [vmem:[%s2162_s18 + $0x328] sm:$0xff] %v788_v3  ;;  %936 = vst [vmem:[%s2162_s18 + $0x330] sm:$0xff] %v789_v57  ;;  %v800_v58 = vadd.f32 %v2422_v27, %v623_v30  ;;  %v801_v59 = vadd.f32 %v2422_v27, %v624_v4  ;;  %v802_v36 = vadd.f32 %v2422_v27, %v625_v7  ;;  %v3229_v6 = vunpack.c.h.bf16 %v3227_v34  ;;  %v3230_v3 = vld [vmem:[#allocation27_spill] sm:$0xff] }
  0xea   : > { %937 = vst [vmem:[%s2162_s18 + $0x338] sm:$0xff] %v790_v15  ;;  %938 = vst [vmem:[%s2162_s18 + $0x340] sm:$0xff] %v791_v48  ;;  %v803_v25 = vadd.f32 %v2422_v27, %v626_v44  ;;  %v804_v21 = vadd.f32 %v2422_v27, %v627_v10  ;;  %v805_v42 = vadd.f32 %v2422_v27, %v628_v31  ;;  %v3231_v57 = vunpack.c.l.bf16 %v3230_v3 }
  0xeb   : > { %939 = vst [vmem:[%s2162_s18 + $0x348] sm:$0xff] %v792_v14  ;;  %940 = vst [vmem:[%s2162_s18 + $0x350] sm:$0xff] %v793_v40  ;;  %v806_v18 = vadd.f32 %v2422_v27, %v629_v17  ;;  %v807_v13 = vadd.f32 %v2422_v27, %v630_v22  ;;  %v808_v30 = vadd.f32 %v2422_v27, %v2360_v16  ;;  %v3232_v48 = vunpack.c.h.bf16 %v3230_v3  ;;  %v3233_v40 = vld [vmem:[#allocation28_spill] sm:$0xff] }
  0xec   : > { %941 = vst [vmem:[%s2162_s18 + $0x358] sm:$0xff] %v794_v41  ;;  %942 = vst [vmem:[%s2162_s18 + $0x360] sm:$0xff] %v795_v47  ;;  %v809_v4 = vadd.f32 %v2422_v27, %v2365_v54  ;;  %v810_v7 = vadd.f32 %v2422_v27, %v2370_v63  ;;  %v811_v44 = vadd.f32 %v2422_v27, %v2375_v35  ;;  %v3234_v41 = vunpack.c.l.bf16 %v3233_v40 }
  0xed   : > { %943 = vst [vmem:[%s2162_s18 + $0x368] sm:$0xff] %v796_v52  ;;  %944 = vst [vmem:[%s2162_s18 + $0x370] sm:$0xff] %v797_v53  ;;  %v812_v10 = vadd.f32 %v2422_v27, %v2380_v56  ;;  %v813_v31 = vadd.f32 %v2422_v27, %v2385_v5  ;;  %v814_v17 = vadd.f32 %v2422_v27, %v2390_v2  ;;  %v2563_v56 = vpop.permute.xlu0 %503  ;;  %v3235_v52 = vunpack.c.h.bf16 %v3233_v40 }
  0xee   : > { %945 = vst [vmem:[%s2162_s18 + $0x378] sm:$0xff] %v798_v0  ;;  %946 = vst [vmem:[%s2162_s18 + $0x380] sm:$0xff] %v799_v51  ;;  %v815_v22 = vadd.f32 %v2422_v27, %v2395_v19  ;;  %v816_v16 = vadd.f32 %v2422_v27, %v2400_v38  ;;  %v817_v54 = vadd.f32 %v2422_v27, %v2405_v24  ;;  %v3236_v0 = vld [vmem:[#allocation29_spill] sm:$0xff] }
  0xef   : > { %947 = vst [vmem:[%s2162_s18 + $0x388] sm:$0xff] %v800_v58  ;;  %948 = vst [vmem:[%s2162_s18 + $0x390] sm:$0xff] %v801_v59  ;;  %v818_v63 = vadd.f32 %v2422_v27, %v2410_v62  ;;  %v819_v35 = vadd.f32 %v2422_v27, %v2415_v55  ;;  %v820_v5 = vadd.f32 %v2422_v27, %v2420_v33  ;;  %v3237_v51 = vunpack.c.l.bf16 %v3236_v0 }
  0xf0   : > { %949 = vst [vmem:[%s2162_s18 + $0x398] sm:$0xff] %v802_v36  ;;  %950 = vst [vmem:[%s2162_s18 + $0x3a0] sm:$0xff] %v803_v25  ;;  %v821_v2 = vadd.f32 %v2422_v27, %v2427_v9  ;;  %v822_v19 = vadd.f32 %v2422_v27, %v2432_v12  ;;  %v823_v38 = vadd.f32 %v2422_v27, %v2437_v11  ;;  %v3238_v59 = vunpack.c.h.bf16 %v3236_v0  ;;  %v3239_v25 = vld [vmem:[#allocation30_spill] sm:$0xff] }
  0xf1   : > { %951 = vst [vmem:[%s2162_s18 + $0x3a8] sm:$0xff] %v804_v21  ;;  %952 = vst [vmem:[%s2162_s18 + $0x3b0] sm:$0xff] %v805_v42  ;;  %v824_v24 = vadd.f32 %v2422_v27, %v2442_v29  ;;  %v825_v62 = vadd.f32 %v2422_v27, %v2447_v37  ;;  %v826_v55 = vadd.f32 %v2422_v27, %v2452_v43  ;;  %v3240_v21 = vunpack.c.l.bf16 %v3239_v25 }
  0xf2   : > { %953 = vst [vmem:[%s2162_s18 + $0x3b8] sm:$0xff] %v806_v18  ;;  %954 = vst [vmem:[%s2162_s18 + $0x3c0] sm:$0xff] %v807_v13  ;;  %v827_v33 = vadd.f32 %v2422_v27, %v2457_v1  ;;  %v828_v9 = vadd.f32 %v2422_v27, %v2462_v32  ;;  %v829_v12 = vadd.f32 %v2422_v27, %v2467_v20  ;;  %v3220_v1 = vld [vmem:[#allocation49_spill] sm:$0xff]  ;;  %v3221_v32 = vld [vmem:[#allocation24_spill] sm:$0xff]  ;;  %v3241_v18 = vunpack.c.h.bf16 %v3239_v25 }
  0xf3   : > { %955 = vst [vmem:[%s2162_s18 + $0x3c8] sm:$0xff] %v808_v30  ;;  %956 = vst [vmem:[%s2162_s18 + $0x3d0] sm:$0xff] %v809_v4  ;;  %v830_v11 = vadd.f32 %v2422_v27, %v2472_v50  ;;  %v831_v29 = vadd.f32 %v2422_v27, %v2477_v23  ;;  %v832_v37 = vadd.f32 %v2422_v27, %v2482_v60  ;;  %v3222_v20 = vunpack.c.l.bf16 %v3221_v32  ;;  %v3224_v23 = vld [vmem:[#allocation25_spill] sm:$0xff]  ;;  %v3242_v30 = vld [vmem:[#allocation31_spill] sm:$0xff] }
  0xf4   : > { %957 = vst [vmem:[%s2162_s18 + $0x3d8] sm:$0xff] %v810_v7  ;;  %958 = vst [vmem:[%s2162_s18 + $0x3e0] sm:$0xff] %v811_v44  ;;  %v833_v43 = vadd.f32 %v2422_v27, %v2487_v49  ;;  %v3223_v26 = vunpack.c.h.bf16 %v3221_v32  ;;  %v3225_v27 = vunpack.c.l.bf16 %v3224_v23  ;;  %v3226_v60 = vunpack.c.h.bf16 %v3224_v23  ;;  %v3260_v23 = vld [vmem:[#allocation37_spill] sm:$0xff]  ;;  %v3269_v25 = vld [vmem:[#allocation40_spill] sm:$0xff] }
  0xf5   : > { %959 = vst [vmem:[%s2162_s18 + $0x3e8] sm:$0xff] %v812_v10  ;;  %960 = vst [vmem:[%s2162_s18 + $0x3f0] sm:$0xff] %v813_v31  ;;  %v558_v50 = vmul.f32 %v3222_v20, %v3220_v1  ;;  %v3228_v49 = vunpack.c.l.bf16 %v3227_v34  ;;  %v563_v61 = vmul.f32 %v3229_v6, %v2563_v56  ;;  %v564_v15 = vmul.f32 %v3231_v57, %v2563_v56  ;;  %v3245_v31 = vld [vmem:[#allocation32_spill] sm:$0xff]  ;;  %v3263_v6 = vld [vmem:[#allocation38_spill] sm:$0xff] }
  0xf6   : > { %961 = vst [vmem:[%s2162_s18 + $0x3f8] sm:$0xff] %v814_v17  ;;  %962 = vst [vmem:[%s2162_s18 + $0x400] sm:$0xff] %v815_v22  ;;  %v559_v8 = vmul.f32 %v3223_v26, %v2563_v56  ;;  %v560_v39 = vmul.f32 %v3225_v27, %v2563_v56  ;;  %v561_v28 = vmul.f32 %v3226_v60, %v2563_v56  ;;  %v3243_v4 = vunpack.c.l.bf16 %v3242_v30 }
  0xf7   : > { %963 = vst [vmem:[%s2162_s18 + $0x408] sm:$0xff] %v816_v16  ;;  %964 = vst [vmem:[%s2162_s18 + $0x410] sm:$0xff] %v817_v54  ;;  %v562_v46 = vmul.f32 %v3228_v49, %v2563_v56  ;;  %v565_v14 = vmul.f32 %v3232_v48, %v2563_v56  ;;  %v566_v47 = vmul.f32 %v3234_v41, %v2563_v56  ;;  %v3244_v44 = vunpack.c.h.bf16 %v3242_v30  ;;  %v3266_v41 = vld [vmem:[#allocation39_spill] sm:$0xff] }
  0xf8   : > { %965 = vst [vmem:[%s2162_s18 + $0x418] sm:$0xff] %v818_v63  ;;  %966 = vst [vmem:[%s2162_s18 + $0x420] sm:$0xff] %v819_v35  ;;  %v567_v53 = vmul.f32 %v3235_v52, %v2563_v56  ;;  %v568_v58 = vmul.f32 %v3237_v51, %v2563_v56  ;;  %v569_v36 = vmul.f32 %v3238_v59, %v2563_v56  ;;  %v3246_v17 = vunpack.c.l.bf16 %v3245_v31  ;;  %v3248_v63 = vld [vmem:[#allocation33_spill] sm:$0xff] }
  0xf9   : > { %967 = vst [vmem:[%s2162_s18 + $0x428] sm:$0xff] %v820_v5  ;;  %968 = vst [vmem:[%s2162_s18 + $0x430] sm:$0xff] %v821_v2  ;;  %v570_v42 = vmul.f32 %v3240_v21, %v2563_v56  ;;  %v571_v13 = vmul.f32 %v3241_v18, %v2563_v56  ;;  %v572_v7 = vmul.f32 %v3243_v4, %v2563_v56  ;;  %v3247_v16 = vunpack.c.h.bf16 %v3245_v31 }
  0xfa   : > { %969 = vst [vmem:[%s2162_s18 + $0x438] sm:$0xff] %v822_v19  ;;  %970 = vst [vmem:[%s2162_s18 + $0x440] sm:$0xff] %v823_v38  ;;  %v573_v10 = vmul.f32 %v3244_v44, %v2563_v56  ;;  %v574_v22 = vmul.f32 %v3246_v17, %v2563_v56  ;;  %v3249_v35 = vunpack.c.l.bf16 %v3248_v63  ;;  %v3250_v2 = vunpack.c.h.bf16 %v3248_v63  ;;  %v3251_v38 = vld [vmem:[#allocation34_spill] sm:$0xff]  ;;  %v3272_v44 = vld [vmem:[#allocation41_spill] sm:$0xff] }
  0xfb   : > { %971 = vst [vmem:[%s2162_s18 + $0x448] sm:$0xff] %v824_v24  ;;  %972 = vst [vmem:[%s2162_s18 + $0x450] sm:$0xff] %v825_v62  ;;  %v575_v54 = vmul.f32 %v3247_v16, %v2563_v56  ;;  %v3252_v24 = vunpack.c.l.bf16 %v3251_v38  ;;  %v3261_v27 = vunpack.c.l.bf16 %v3260_v23  ;;  %v3262_v34 = vunpack.c.h.bf16 %v3260_v23  ;;  %v3281_v23 = vld [vmem:[#allocation44_spill] sm:$0xff] }
  0xfc   : > { %973 = vst [vmem:[%s2162_s18 + $0x458] sm:$0xff] %v826_v55  ;;  %974 = vst [vmem:[%s2162_s18 + $0x460] sm:$0xff] %v827_v33  ;;  %v576_v5 = vmul.f32 %v3249_v35, %v2563_v56  ;;  %v577_v19 = vmul.f32 %v3250_v2, %v2563_v56  ;;  %v3253_v55 = vunpack.c.h.bf16 %v3251_v38  ;;  %v3264_v3 = vunpack.c.l.bf16 %v3263_v6  ;;  %v3275_v35 = vld [vmem:[#allocation42_spill] sm:$0xff] }
  0xfd   : > { %975 = vst [vmem:[%s2162_s18 + $0x468] sm:$0xff] %v828_v9  ;;  %976 = vst [vmem:[%s2162_s18 + $0x470] sm:$0xff] %v829_v12  ;;  %v2678_v62 = vmul.f32 %v3252_v24, %v2563_v56  ;;  %v3254_v9 = vld [vmem:[#allocation35_spill] sm:$0xff]  ;;  %v2708_v60 = vmul.f32 %v3261_v27, %v2563_v56  ;;  %v2713_v49 = vmul.f32 %v3262_v34, %v2563_v56  ;;  %v3265_v48 = vunpack.c.h.bf16 %v3263_v6 }
  0xfe   : > { %977 = vst [vmem:[%s2162_s18 + $0x478] sm:$0xff] %v830_v11  ;;  %978 = vst [vmem:[%s2162_s18 + $0x480] sm:$0xff] %v831_v29  ;;  %v2683_v33 = vmul.f32 %v3253_v55, %v2563_v56  ;;  %v3255_v12 = vunpack.c.l.bf16 %v3254_v9  ;;  %v3256_v29 = vunpack.c.h.bf16 %v3254_v9  ;;  %v2718_v57 = vmul.f32 %v3264_v3, %v2563_v56  ;;  %v2765_v9 = vpop.permute.xlu0 %680 }
  0xff   : > { %979 = vst [vmem:[%s2162_s18 + $0x488] sm:$0xff] %v832_v37  ;;  %980 = vst [vmem:[%s2162_s18 + $0x490] sm:$0xff] %v833_v43  ;;  %v3257_v43 = vld [vmem:[#allocation36_spill] sm:$0xff]  ;;  %v2723_v40 = vmul.f32 %v3265_v48, %v2563_v56  ;;  %v3267_v52 = vunpack.c.l.bf16 %v3266_v41  ;;  %v3268_v51 = vunpack.c.h.bf16 %v3266_v41  ;;  %v3270_v21 = vunpack.c.l.bf16 %v3269_v25  ;;  %v3284_v48 = vld [vmem:[#allocation45_spill] sm:$0xff] }
 0x100   : > { %v2688_v11 = vmul.f32 %v3255_v12, %v2563_v56  ;;  %v2693_v37 = vmul.f32 %v3256_v29, %v2563_v56  ;;  %v3258_v1 = vunpack.c.l.bf16 %v3257_v43  ;;  %v3259_v20 = vunpack.c.h.bf16 %v3257_v43  ;;  %v3278_v12 = vld [vmem:[#allocation43_spill] sm:$0xff] }
 0x101   : > { %v2728_v0 = vmul.f32 %v3267_v52, %v2563_v56  ;;  %v2733_v59 = vmul.f32 %v3268_v51, %v2563_v56  ;;  %v2738_v18 = vmul.f32 %v3270_v21, %v2563_v56  ;;  %v3271_v30 = vunpack.c.h.bf16 %v3269_v25  ;;  %v3287_v21 = vld [vmem:[#allocation46_spill] sm:$0xff] }
 0x102   : > { %v2698_v32 = vmul.f32 %v3258_v1, %v2563_v56  ;;  %v2703_v26 = vmul.f32 %v3259_v20, %v2563_v56  ;;  %v3273_v31 = vunpack.c.l.bf16 %v3272_v44  ;;  %v3274_v16 = vunpack.c.h.bf16 %v3272_v44 }
 0x103   : > { %v2743_v4 = vmul.f32 %v3271_v30, %v2563_v56  ;;  %v3276_v2 = vunpack.c.l.bf16 %v3275_v35  ;;  %v3277_v24 = vunpack.c.h.bf16 %v3275_v35  ;;  %v3279_v29 = vunpack.c.l.bf16 %v3278_v12  ;;  %v3290_v35 = vld [vmem:[#allocation47_spill] sm:$0xff] }
 0x104   : > { %v2748_v17 = vmul.f32 %v3273_v31, %v2563_v56  ;;  %v2753_v63 = vmul.f32 %v3274_v16, %v2563_v56  ;;  %v3280_v1 = vunpack.c.h.bf16 %v3278_v12  ;;  %v3282_v27 = vunpack.c.l.bf16 %v3281_v23 }
 0x105   : > { %v2758_v38 = vmul.f32 %v3276_v2, %v2563_v56  ;;  %v2763_v55 = vmul.f32 %v3277_v24, %v2563_v56  ;;  %v2770_v43 = vmul.f32 %v3279_v29, %v2563_v56  ;;  %v3283_v6 = vunpack.c.h.bf16 %v3281_v23 }
 0x106   : > { %v2775_v20 = vmul.f32 %v3280_v1, %v2563_v56  ;;  %v2780_v34 = vmul.f32 %v3282_v27, %v2563_v56  ;;  %v3285_v41 = vunpack.c.l.bf16 %v3284_v48  ;;  %v3286_v51 = vunpack.c.h.bf16 %v3284_v48  ;;  %v3293_v1 = vld [vmem:[#allocation48_spill] sm:$0xff] }
 0x107   : > { %v2785_v3 = vmul.f32 %v3283_v6, %v2563_v56  ;;  %v3288_v30 = vunpack.c.l.bf16 %v3287_v21  ;;  %v3289_v31 = vunpack.c.h.bf16 %v3287_v21  ;;  %v3291_v2 = vunpack.c.l.bf16 %v3290_v35 }
 0x108   : > { %v2790_v52 = vmul.f32 %v3285_v41, %v2563_v56  ;;  %v2795_v25 = vmul.f32 %v3286_v51, %v2563_v56  ;;  %v3292_v12 = vunpack.c.h.bf16 %v3290_v35  ;;  %v3294_v23 = vunpack.c.l.bf16 %v3293_v1 }
 0x109   : > { %v2800_v44 = vmul.f32 %v3288_v30, %v2563_v56  ;;  %v2805_v16 = vmul.f32 %v3289_v31, %v2563_v56  ;;  %v2810_v24 = vmul.f32 %v3291_v2, %v2563_v56  ;;  %v3295_v6 = vunpack.c.h.bf16 %v3293_v1 }
 0x10a   : > { %v2815_v29 = vmul.f32 %v3292_v12, %v2563_v56  ;;  %v2820_v27 = vmul.f32 %v3294_v23, %v2563_v56  ;;  %v735_v41 = vadd.f32 %v2117_v45, %v558_v50  ;;  %v736_v51 = vadd.f32 %v2765_v9, %v559_v8 }
 0x10b   : > { %v2825_v48 = vmul.f32 %v3295_v6, %v2563_v56  ;;  %v737_v21 = vadd.f32 %v2765_v9, %v560_v39  ;;  %v738_v30 = vadd.f32 %v2765_v9, %v561_v28  ;;  %v739_v31 = vadd.f32 %v2765_v9, %v562_v46 }
 0x10c   : > { %v740_v35 = vadd.f32 %v2765_v9, %v563_v61  ;;  %v741_v2 = vadd.f32 %v2765_v9, %v564_v15  ;;  %v742_v56 = vadd.f32 %v2765_v9, %v565_v14  ;;  %v743_v45 = vadd.f32 %v2765_v9, %v566_v47  ;;  %882 = vst [vmem:[%s2162_s18 + $0x180] sm:$0xff] %v735_v41 }
 0x10d   : > { %v744_v50 = vadd.f32 %v2765_v9, %v567_v53  ;;  %v745_v8 = vadd.f32 %v2765_v9, %v568_v58  ;;  %v746_v39 = vadd.f32 %v2765_v9, %v569_v36  ;;  %883 = vst [vmem:[%s2162_s18 + $0x188] sm:$0xff] %v736_v51  ;;  %884 = vst [vmem:[%s2162_s18 + $0x190] sm:$0xff] %v737_v21 }
 0x10e   : > { %885 = vst [vmem:[%s2162_s18 + $0x198] sm:$0xff] %v738_v30  ;;  %v747_v28 = vadd.f32 %v2765_v9, %v570_v42  ;;  %v748_v46 = vadd.f32 %v2765_v9, %v571_v13  ;;  %v749_v61 = vadd.f32 %v2765_v9, %v572_v7  ;;  %v750_v15 = vadd.f32 %v2765_v9, %v573_v10 }
 0x10f   : > { %886 = vst [vmem:[%s2162_s18 + $0x1a0] sm:$0xff] %v739_v31  ;;  %887 = vst [vmem:[%s2162_s18 + $0x1a8] sm:$0xff] %v740_v35  ;;  %v751_v14 = vadd.f32 %v2765_v9, %v574_v22  ;;  %v752_v47 = vadd.f32 %v2765_v9, %v575_v54  ;;  %v753_v53 = vadd.f32 %v2765_v9, %v576_v5 }
 0x110   : > { %888 = vst [vmem:[%s2162_s18 + $0x1b0] sm:$0xff] %v741_v2  ;;  %889 = vst [vmem:[%s2162_s18 + $0x1b8] sm:$0xff] %v742_v56  ;;  %v754_v58 = vadd.f32 %v2765_v9, %v577_v19  ;;  %v755_v36 = vadd.f32 %v2765_v9, %v2678_v62  ;;  %v756_v42 = vadd.f32 %v2765_v9, %v2683_v33 }
 0x111   : > { %890 = vst [vmem:[%s2162_s18 + $0x1c0] sm:$0xff] %v743_v45  ;;  %891 = vst [vmem:[%s2162_s18 + $0x1c8] sm:$0xff] %v744_v50  ;;  %v757_v13 = vadd.f32 %v2765_v9, %v2688_v11  ;;  %v758_v7 = vadd.f32 %v2765_v9, %v2693_v37  ;;  %v759_v10 = vadd.f32 %v2765_v9, %v2698_v32 }
 0x112   : > { %892 = vst [vmem:[%s2162_s18 + $0x1d0] sm:$0xff] %v745_v8  ;;  %893 = vst [vmem:[%s2162_s18 + $0x1d8] sm:$0xff] %v746_v39  ;;  %v760_v22 = vadd.f32 %v2765_v9, %v2703_v26  ;;  %v761_v54 = vadd.f32 %v2765_v9, %v2708_v60  ;;  %v762_v5 = vadd.f32 %v2765_v9, %v2713_v49 }
 0x113   : > { %894 = vst [vmem:[%s2162_s18 + $0x1e0] sm:$0xff] %v747_v28  ;;  %895 = vst [vmem:[%s2162_s18 + $0x1e8] sm:$0xff] %v748_v46  ;;  %v763_v19 = vadd.f32 %v2765_v9, %v2718_v57  ;;  %v764_v62 = vadd.f32 %v2765_v9, %v2723_v40  ;;  %v765_v33 = vadd.f32 %v2765_v9, %v2728_v0 }
 0x114   : > { %896 = vst [vmem:[%s2162_s18 + $0x1f0] sm:$0xff] %v749_v61  ;;  %897 = vst [vmem:[%s2162_s18 + $0x1f8] sm:$0xff] %v750_v15  ;;  %v766_v11 = vadd.f32 %v2765_v9, %v2733_v59  ;;  %v767_v37 = vadd.f32 %v2765_v9, %v2738_v18  ;;  %v768_v32 = vadd.f32 %v2765_v9, %v2743_v4 }
 0x115   : > { %898 = vst [vmem:[%s2162_s18 + $0x200] sm:$0xff] %v751_v14  ;;  %899 = vst [vmem:[%s2162_s18 + $0x208] sm:$0xff] %v752_v47  ;;  %v769_v26 = vadd.f32 %v2765_v9, %v2748_v17  ;;  %v770_v60 = vadd.f32 %v2765_v9, %v2753_v63  ;;  %v771_v49 = vadd.f32 %v2765_v9, %v2758_v38 }
 0x116   : > { %900 = vst [vmem:[%s2162_s18 + $0x210] sm:$0xff] %v753_v53  ;;  %901 = vst [vmem:[%s2162_s18 + $0x218] sm:$0xff] %v754_v58  ;;  %v772_v57 = vadd.f32 %v2765_v9, %v2763_v55  ;;  %v773_v40 = vadd.f32 %v2765_v9, %v2770_v43  ;;  %v774_v0 = vadd.f32 %v2765_v9, %v2775_v20 }
 0x117   : > { %902 = vst [vmem:[%s2162_s18 + $0x220] sm:$0xff] %v755_v36  ;;  %903 = vst [vmem:[%s2162_s18 + $0x228] sm:$0xff] %v756_v42  ;;  %v775_v59 = vadd.f32 %v2765_v9, %v2780_v34  ;;  %v776_v18 = vadd.f32 %v2765_v9, %v2785_v3  ;;  %v777_v4 = vadd.f32 %v2765_v9, %v2790_v52 }
 0x118   : > { %904 = vst [vmem:[%s2162_s18 + $0x230] sm:$0xff] %v757_v13  ;;  %905 = vst [vmem:[%s2162_s18 + $0x238] sm:$0xff] %v758_v7  ;;  %v778_v17 = vadd.f32 %v2765_v9, %v2795_v25  ;;  %v779_v63 = vadd.f32 %v2765_v9, %v2800_v44  ;;  %v780_v38 = vadd.f32 %v2765_v9, %v2805_v16 }
 0x119   : > { %906 = vst [vmem:[%s2162_s18 + $0x240] sm:$0xff] %v759_v10  ;;  %907 = vst [vmem:[%s2162_s18 + $0x248] sm:$0xff] %v760_v22  ;;  %v781_v55 = vadd.f32 %v2765_v9, %v2810_v24  ;;  %v782_v43 = vadd.f32 %v2765_v9, %v2815_v29  ;;  %v783_v20 = vadd.f32 %v2765_v9, %v2820_v27 }
 0x11a   : > { %908 = vst [vmem:[%s2162_s18 + $0x250] sm:$0xff] %v761_v54  ;;  %909 = vst [vmem:[%s2162_s18 + $0x258] sm:$0xff] %v762_v5  ;;  %v784_v34 = vadd.f32 %v2765_v9, %v2825_v48 }
 0x11b   : > { %910 = vst [vmem:[%s2162_s18 + $0x260] sm:$0xff] %v763_v19  ;;  %911 = vst [vmem:[%s2162_s18 + $0x268] sm:$0xff] %v764_v62 }
 0x11c   : > { %912 = vst [vmem:[%s2162_s18 + $0x270] sm:$0xff] %v765_v33  ;;  %913 = vst [vmem:[%s2162_s18 + $0x278] sm:$0xff] %v766_v11 }
 0x11d   : > { %914 = vst [vmem:[%s2162_s18 + $0x280] sm:$0xff] %v767_v37  ;;  %915 = vst [vmem:[%s2162_s18 + $0x288] sm:$0xff] %v768_v32 }
 0x11e   : > { %916 = vst [vmem:[%s2162_s18 + $0x290] sm:$0xff] %v769_v26  ;;  %917 = vst [vmem:[%s2162_s18 + $0x298] sm:$0xff] %v770_v60 }
 0x11f   : > { %918 = vst [vmem:[%s2162_s18 + $0x2a0] sm:$0xff] %v771_v49  ;;  %919 = vst [vmem:[%s2162_s18 + $0x2a8] sm:$0xff] %v772_v57 }
 0x120   : > { %920 = vst [vmem:[%s2162_s18 + $0x2b0] sm:$0xff] %v773_v40  ;;  %921 = vst [vmem:[%s2162_s18 + $0x2b8] sm:$0xff] %v774_v0 }
 0x121   : > { %922 = vst [vmem:[%s2162_s18 + $0x2c0] sm:$0xff] %v775_v59  ;;  %923 = vst [vmem:[%s2162_s18 + $0x2c8] sm:$0xff] %v776_v18 }
 0x122   : > { %924 = vst [vmem:[%s2162_s18 + $0x2d0] sm:$0xff] %v777_v4  ;;  %925 = vst [vmem:[%s2162_s18 + $0x2d8] sm:$0xff] %v778_v17 }
 0x123   : > { %926 = vst [vmem:[%s2162_s18 + $0x2e0] sm:$0xff] %v779_v63  ;;  %927 = vst [vmem:[%s2162_s18 + $0x2e8] sm:$0xff] %v780_v38 }
 0x124   : > { %928 = vst [vmem:[%s2162_s18 + $0x2f0] sm:$0xff] %v781_v55  ;;  %929 = vst [vmem:[%s2162_s18 + $0x2f8] sm:$0xff] %v782_v43 }
 0x125   : > { %930 = vst [vmem:[%s2162_s18 + $0x300] sm:$0xff] %v783_v20  ;;  %931 = vst [vmem:[%s2162_s18 + $0x308] sm:$0xff] %v784_v34 }
 0x126 PF: > { %s14_s12 = sadd.s32 1, %s1493_s12  }
 0x127   : > { %p11_p3 = scmp.ge.s32.totalorder %s14_s12, 4  }
 0x129   :  { %13 = sbr.rel (!%p11_p3) target bundleno = 1 (0x1), region = 67 }
 0x130   :  { %1002 = vsyncpa [#allocation3], 1 }
 0x131   :  { %1004 = vsyncpa [#allocation3 + $0x1], 1 }

</bundles_post_ra>
